<compile_context>
chip_gen: v5e
topology: v5e:2x2
jax: 0.10.0
libtpu: 0.0.40
codegen_flags: <defaults>
</compile_context>

<pallas_src>
import functools

import jax
import jax.numpy as jnp
from jax.experimental import pallas as pl
from jax.experimental.pallas import tpu as pltpu

ALPHA = 0.25
GAMMA = 0.5          # the kernel hard-codes gamma == 0.5 as sqrt (guarded below)
LANES = 128
SUBLANES = 8
MAX_TILE_ROWS = 4096  # 4096x128 f32 = 2 MiB per stream per pipeline buffer

assert GAMMA == 0.5, "kernel hard-codes gamma == 0.5 (sqrt); update the kernel if changed"


def _focal_loss_kernel(x_ref, t_ref, out_ref, acc_ref, *, steps):
    """One (tile_rows, 128) tile of focal-weighted BCE-with-logits, accumulated
    into an (8, 128) VMEM accumulator; a (1, 1) partial is written on the last step."""
    j = pl.program_id(1)  # reduction axis (last grid axis)

    @pl.when(j == 0)
    def _():
        acc_ref[...] = jnp.zeros_like(acc_ref)

    x = x_ref[...].astype(jnp.float32)
    t = t_ref[...].astype(jnp.float32)

    # One shared transcendental feeds both sigmoid and the stable BCE log term.
    e = jnp.exp(-jnp.abs(x))
    inv = pl.reciprocal(1.0 + e, approx=True)   # EUP vrcp; ~1e-4 relative error
    p = jnp.where(x >= 0, inv, e * inv)          # sigmoid(x), numerically stable

    # Folded focal weight (gamma = 0.5 -> sqrt):
    #   1 - pt                    = p + t - 2*p*t
    #   alpha*t + (1-alpha)*(1-t) = (1-alpha) + (2*alpha-1)*t
    one_minus_pt = p + t - 2.0 * (p * t)
    alpha_w = (1.0 - ALPHA) + (2.0 * ALPHA - 1.0) * t
    w = alpha_w * jnp.sqrt(jnp.maximum(one_minus_pt, 0.0))

    # binary_cross_entropy_with_logits (stable form, matches PyTorch):
    #   max(x, 0) - x*t + log1p(exp(-|x|))
    bce = jnp.maximum(x, 0.0) - x * t + jnp.log1p(e)
    loss = w * bce

    tile_rows = loss.shape[0]
    acc_ref[...] += loss.reshape(tile_rows // SUBLANES, SUBLANES, LANES).sum(axis=0)

    # Epilogue: one full (8,128) reduction per core, write the (1,1) partial.
    @pl.when(j == steps - 1)
    def _():
        out_ref[...] = jnp.sum(acc_ref[...]).reshape(1, 1)


def _focal_loss_sum_jnp(x, t):
    """Reference-math partial sum for the small remainder the grid doesn't cover."""
    x = x.astype(jnp.float32)
    t = t.astype(jnp.float32)
    p = jax.nn.sigmoid(x)
    one_minus_pt = p + t - 2.0 * (p * t)
    w = ((1.0 - ALPHA) + (2.0 * ALPHA - 1.0) * t) * jnp.sqrt(jnp.maximum(one_minus_pt, 0.0))
    bce = jnp.maximum(x, 0.0) - x * t + jnp.log1p(jnp.exp(-jnp.abs(x)))
    return jnp.sum(w * bce)


def _num_tensorcores():
    # Only v7x exposes 2 TensorCores per chip to a single pallas_call; v5e/v6e
    # have a single TC, where an extra grid axis is pure overhead.
    try:
        kind = jax.devices()[0].device_kind.lower()
    except Exception:
        return 1
    return 2 if ("v7" in kind or "7x" in kind) else 1


@functools.partial(jax.jit, static_argnames=("num_classes", "binary_targets"))
def focal_loss(preds, targets, num_classes=1, binary_targets=True):
    assert preds.shape == targets.shape
    n = preds.size  # static under jit
    if n == 0:      # empty input: define the loss as 0 (avoids 0-size grid / NaN)
        return jnp.float32(0.0)

    x = preds.reshape(-1)   # free bitcast; native dtype (cast happens in-kernel)
    t = targets.reshape(-1)
    if binary_targets and t.dtype.itemsize > 2:
        # Exact for {0,1} labels; halves the targets' HBM traffic into the kernel.
        # (In a fused training graph the convert folds into the producer.)
        t = t.astype(jnp.bfloat16)

    rows_total = n // LANES             # full 128-lane rows
    lane_tail = n - rows_total * LANES  # < 128 ragged elements

    ncores = _num_tensorcores()
    rows_per_core = rows_total // ncores
    tile_rows = min(MAX_TILE_ROWS, (rows_per_core // SUBLANES) * SUBLANES)
    if tile_rows == 0 and rows_total >= SUBLANES:
        ncores = 1                      # too small to split across cores
        tile_rows = min(MAX_TILE_ROWS, (rows_total // SUBLANES) * SUBLANES)
    steps = rows_total // (ncores * tile_rows) if tile_rows else 0

    total = jnp.float32(0.0)

    if steps > 0:
        rows_main = ncores * steps * tile_rows
        # 2-D lane-major view. Zero-copy when n % 128 == 0 (the usual NCHW
        # case); otherwise a single head slice (ragged lane tail finished below).
        x2 = x[: rows_total * LANES].reshape(rows_total, LANES)
        t2 = t[: rows_total * LANES].reshape(rows_total, LANES)

        in_spec = pl.BlockSpec((tile_rows, LANES),
                               lambda c, j: (c * steps + j, 0))
        dims = ((pltpu.CORE_PARALLEL, pltpu.ARBITRARY) if ncores > 1
                else (pltpu.ARBITRARY, pltpu.ARBITRARY))

        partials = pl.pallas_call(
            functools.partial(_focal_loss_kernel, steps=steps),
            out_shape=jax.ShapeDtypeStruct((ncores, 1), jnp.float32),
            grid_spec=pltpu.PrefetchScalarGridSpec(
                num_scalar_prefetch=0,
                grid=(ncores, steps),
                in_specs=[in_spec, in_spec],
                out_specs=pl.BlockSpec((1, 1), lambda c, j: (c, 0)),
                scratch_shapes=[pltpu.VMEM((SUBLANES, LANES), jnp.float32)],
            ),
            compiler_params=pltpu.CompilerParams(
                dimension_semantics=dims,
                # Headroom for 4096-row tiles + elementwise temporaries; well
                # below physical VMEM on v5e/v6e (128 MiB) and v7x (64 MiB/TC).
                vmem_limit_bytes=48 * 1024 * 1024,
            ),
        )(x2, t2)
        total = total + jnp.sum(partials)

        if rows_main < rows_total:  # < ncores*tile_rows leftover full rows
            total = total + _focal_loss_sum_jnp(x2[rows_main:], t2[rows_main:])
    elif rows_total > 0:            # input smaller than one tile: pure jnp
        total = total + _focal_loss_sum_jnp(x[: rows_total * LANES],
                                            t[: rows_total * LANES])

    if lane_tail:                   # ragged < 128-element tail: pure jnp
        total = total + _focal_loss_sum_jnp(x[rows_total * LANES:],
                                            t[rows_total * LANES:])

    # mean over all elements, then / num_classes (as in the PyTorch module)
    return total / jnp.float32(n) / jnp.float32(num_classes)


def _reference(preds, targets, num_classes=1):
    x = preds.astype(jnp.float32)
    t = targets.astype(jnp.float32)
    p = jax.nn.sigmoid(x)
    pt = p * t + (1 - p) * (1 - t)
    w = (ALPHA * t + (1 - ALPHA) * (1 - t)) * (1 - pt) ** GAMMA
    bce = jnp.maximum(x, 0.0) - x * t + jnp.log1p(jnp.exp(-jnp.abs(x)))
    return jnp.mean(w * bce) / num_classes


if __name__ == "__main__":
    key = jax.random.PRNGKey(0)
    k1, k2, k3, k4 = jax.random.split(key, 4)

    # NCHW inputs, as the PyTorch module would receive.
    preds = jax.random.normal(k1, (2, 4, 16, 16), dtype=jnp.float32)
    targets = (jax.random.uniform(k2, (2, 4, 16, 16)) > 0.5).astype(jnp.float32)

    out = focal_loss(preds, targets, num_classes=1)
    jax.block_until_ready(out)
    ref = _reference(preds, targets, num_classes=1)
    # rtol loosened for the approx EUP reciprocal in the kernel (~1e-4 rel).
    assert jnp.allclose(out, ref, rtol=5e-3, atol=1e-6), (out, ref)

    # Ragged shape: exercises the remainder-row / lane-tail jnp paths too.
    preds_r = jax.random.normal(k3, (3, 5, 7, 11), dtype=jnp.float32)
    targets_r = (jax.random.uniform(k4, (3, 5, 7, 11)) > 0.5).astype(jnp.float32)
    out_r = focal_loss(preds_r, targets_r, num_classes=2)
    jax.block_until_ready(out_r)
    ref_r = _reference(preds_r, targets_r, num_classes=2)
    assert jnp.allclose(out_r, ref_r, rtol=5e-3, atol=1e-6), (out_r, ref_r)

    print("KERNEL_OK")
</pallas_src>

<mosaic_0001>
module attributes {stable_mosaic.version = 11 : i64} {
  func.func @_focal_loss_kernel(%arg0: i32, %arg1: i32, %arg2: memref<16x128xf32, #tpu.memory_space<vmem>>, %arg3: memref<16x128xbf16, #tpu.memory_space<vmem>>, %arg4: memref<1x1xf32, #tpu.memory_space<vmem>>, %arg5: memref<8x128xf32, #tpu.memory_space<vmem>>) attributes {dimension_semantics = [#tpu.dimension_semantics<arbitrary>, #tpu.dimension_semantics<arbitrary>], iteration_bounds = array<i64: 1, 1>, scalar_prefetch = 0 : i64, scratch_operands = 1 : i64, tpu.core_type = #tpu.core_type<tc>, window_params = [{transform_indices = @transform_0, window_bounds = array<i64: 16, 128>}, {transform_indices = @transform_1, window_bounds = array<i64: 16, 128>}, {transform_indices = @transform_2, window_bounds = array<i64: 1, 1>}]} {
    %c0_i32 = arith.constant 0 : i32
    %0 = arith.cmpi eq, %arg1, %c0_i32 : i32
    %1 = arith.extui %0 : i1 to i32
    %c0_i32_0 = arith.constant 0 : i32
    %2 = arith.cmpi ne, %1, %c0_i32_0 : i32
    scf.if %2 {
      %cst_18 = arith.constant 0.000000e+00 : f32
      %45 = vector.broadcast %cst_18 : f32 to vector<8x128xf32>
      %c0_19 = arith.constant 0 : index
      %c0_20 = arith.constant 0 : index
      %46 = vector.load %arg5[%c0_19, %c0_20] : memref<8x128xf32, #tpu.memory_space<vmem>>, vector<8x128xf32>
      tpu.vector_store %arg5[%c0_19, %c0_20], %45 {strides = array<i32>} : memref<8x128xf32, #tpu.memory_space<vmem>>, vector<8x128xf32>,
    } else {
    }
    %c0 = arith.constant 0 : index
    %c0_1 = arith.constant 0 : index
    %3 = vector.load %arg2[%c0, %c0_1] : memref<16x128xf32, #tpu.memory_space<vmem>>, vector<16x128xf32>
    %c0_2 = arith.constant 0 : index
    %c0_3 = arith.constant 0 : index
    %4 = vector.load %arg3[%c0_2, %c0_3] : memref<16x128xbf16, #tpu.memory_space<vmem>>, vector<16x128xbf16>
    %5 = arith.extf %4 : vector<16x128xbf16> to vector<16x128xf32>
    %6 = math.absf %3 : vector<16x128xf32>
    %cst = arith.constant 0.000000e+00 : f32
    %7 = vector.broadcast %cst : f32 to vector<16x128xf32>
    %8 = arith.subf %7, %6 : vector<16x128xf32>
    %9 = math.exp %8 : vector<16x128xf32>
    %cst_4 = arith.constant 1.000000e+00 : f32
    %10 = vector.broadcast %cst_4 : f32 to vector<16x128xf32>
    %11 = arith.addf %10, %9 : vector<16x128xf32>
    %12 = tpu.reciprocal %11 {approx = true} : vector<16x128xf32> -> vector<16x128xf32>
    %cst_5 = arith.constant 0.000000e+00 : f32
    %13 = vector.broadcast %cst_5 : f32 to vector<16x128xf32>
    %14 = arith.cmpf oge, %3, %13 : vector<16x128xf32>
    %15 = arith.mulf %9, %12 : vector<16x128xf32>
    %16 = arith.select %14, %12, %15 : vector<16x128xi1>, vector<16x128xf32>
    %17 = arith.addf %16, %5 : vector<16x128xf32>
    %18 = arith.mulf %16, %5 : vector<16x128xf32>
    %cst_6 = arith.constant 2.000000e+00 : f32
    %19 = vector.broadcast %cst_6 : f32 to vector<16x128xf32>
    %20 = arith.mulf %19, %18 : vector<16x128xf32>
    %21 = arith.subf %17, %20 : vector<16x128xf32>
    %cst_7 = arith.constant -5.000000e-01 : f32
    %22 = vector.broadcast %cst_7 : f32 to vector<16x128xf32>
    %23 = arith.mulf %22, %5 : vector<16x128xf32>
    %cst_8 = arith.constant 7.500000e-01 : f32
    %24 = vector.broadcast %cst_8 : f32 to vector<16x128xf32>
    %25 = arith.addf %24, %23 : vector<16x128xf32>
    %cst_9 = arith.constant 0.000000e+00 : f32
    %26 = vector.broadcast %cst_9 : f32 to vector<16x128xf32>
    %27 = arith.maximumf %21, %26 : vector<16x128xf32>
    %28 = math.sqrt %27 : vector<16x128xf32>
    %29 = arith.mulf %25, %28 : vector<16x128xf32>
    %cst_10 = arith.constant 0.000000e+00 : f32
    %30 = vector.broadcast %cst_10 : f32 to vector<16x128xf32>
    %31 = arith.maximumf %3, %30 : vector<16x128xf32>
    %32 = arith.mulf %3, %5 : vector<16x128xf32>
    %33 = arith.subf %31, %32 : vector<16x128xf32>
    %34 = math.log1p %9 : vector<16x128xf32>
    %35 = arith.addf %33, %34 : vector<16x128xf32>
    %36 = arith.mulf %29, %35 : vector<16x128xf32>
    %c0_11 = arith.constant 0 : index
    %c0_12 = arith.constant 0 : index
    %37 = vector.load %arg5[%c0_11, %c0_12] : memref<8x128xf32, #tpu.memory_space<vmem>>, vector<8x128xf32>
    %38 = vector.shape_cast %36 : vector<16x128xf32> to vector<2x8x128xf32>
    %cst_13 = arith.constant dense<0.000000e+00> : vector<8x128xf32>
    %39 = vector.multi_reduction <add>, %38, %cst_13 [0] : vector<2x8x128xf32> to vector<8x128xf32>
    %40 = arith.addf %37, %39 : vector<8x128xf32>
    %c0_14 = arith.constant 0 : index
    %c0_15 = arith.constant 0 : index
    %41 = vector.load %arg5[%c0_14, %c0_15] : memref<8x128xf32, #tpu.memory_space<vmem>>, vector<8x128xf32>
    tpu.vector_store %arg5[%c0_14, %c0_15], %40 {strides = array<i32>} : memref<8x128xf32, #tpu.memory_space<vmem>>, vector<8x128xf32>,
    %c0_i32_16 = arith.constant 0 : i32
    %42 = arith.cmpi eq, %arg1, %c0_i32_16 : i32
    %43 = arith.extui %42 : i1 to i32
    %c0_i32_17 = arith.constant 0 : i32
    %44 = arith.cmpi ne, %43, %c0_i32_17 : i32
    scf.if %44 {
      %c0_18 = arith.constant 0 : index
      %c0_19 = arith.constant 0 : index
      %45 = vector.load %arg5[%c0_18, %c0_19] : memref<8x128xf32, #tpu.memory_space<vmem>>, vector<8x128xf32>
      %46 = vector.shape_cast %45 : vector<8x128xf32> to vector<1x8x128xf32>
      %cst_20 = arith.constant dense<0.000000e+00> : vector<1xf32>
      %47 = vector.multi_reduction <add>, %46, %cst_20 [1, 2] : vector<1x8x128xf32> to vector<1xf32>
      %48 = vector.shape_cast %47 : vector<1xf32> to vector<1x1x1xf32>
      %49 = vector.extract %48[0, 0, 0] : f32 from vector<1x1x1xf32>
      %50 = vector.broadcast %49 : f32 to vector<1x1xf32>
      %c0_21 = arith.constant 0 : index
      %c0_22 = arith.constant 0 : index
      %51 = vector.load %arg4[%c0_21, %c0_22] : memref<1x1xf32, #tpu.memory_space<vmem>>, vector<1x1xf32>
      tpu.vector_store %arg4[%c0_21, %c0_22], %50 {strides = array<i32>} : memref<1x1xf32, #tpu.memory_space<vmem>>, vector<1x1xf32>,
    } else {
    }
    return
  }
  func.func @transform_0(%arg0: i32, %arg1: i32) -> (i32, i32) {
    %c1_i32 = arith.constant 1 : i32
    %0 = arith.muli %arg0, %c1_i32 : i32
    %1 = arith.addi %0, %arg1 : i32
    %c0_i32 = arith.constant 0 : i32
    %c0_i32_0 = arith.constant 0 : i32
    return %1, %c0_i32 : i32, i32
  }
  func.func @transform_1(%arg0: i32, %arg1: i32) -> (i32, i32) {
    %c1_i32 = arith.constant 1 : i32
    %0 = arith.muli %arg0, %c1_i32 : i32
    %1 = arith.addi %0, %arg1 : i32
    %c0_i32 = arith.constant 0 : i32
    %c0_i32_0 = arith.constant 0 : i32
    return %1, %c0_i32 : i32, i32
  }
  func.func @transform_2(%arg0: i32, %arg1: i32) -> (i32, i32) {
    %c0_i32 = arith.constant 0 : i32
    %c0_i32_0 = arith.constant 0 : i32
    return %arg0, %c0_i32 : i32, i32
  }
}

</mosaic_0001>

<bundles_post_ra>
// kernel: focal_loss.1
= control target key start
LH: loop header
LB: loop body
LE: loop exit
PB: predicated region body
PF: predicated region fallthrough
CT: control target
= control target key end

     0   :  { %s302_s0 = inlined_call_operand.vmem [shape: f32[16,128], index: 0, kind: input, shape index: {}]   ;;  %s303_s1 = inlined_call_operand.vmem [shape: bf16[16,128], index: 1, kind: input, shape index: {}]   ;;  %s304_s2 = inlined_call_operand.hbm [shape: f32[1,1], index: 2, kind: output, shape index: {}]  }
   0x1   :  { %v269_v0 = vld [vmem:[%s302_s0] sm:$0xff]  ;;  %v274_v1 = vld [vmem:[%s302_s0 + $0x8] sm:$0xff] }
   0x2   :  { %v67_v2 = vand.u32 2147483647, %v269_v0  ;;  %v68_v3 = vand.u32 2147483647, %v274_v1 }
   0x3   :  { %7 = vsyncpa [#allocation4], 0  ;;  %v202_v12 = vld [vmem:[%s303_s1] sm:$0xff]   ;;  %vm79_vm0 = vcmp.ge.f32.partialorder %v269_v0, 0.0  ;;  %vm80_vm1 = vcmp.ge.f32.partialorder %v274_v1, 0.0  ;;  %v125_v46 = vmax.f32 %v269_v0, 0.0 }
   0x4   :  { %v69_v4 = vsub.f32 0.0, %v67_v2  ;;  %v70_v5 = vsub.f32 0.0, %v68_v3  ;;  %v203_v14 = vunpack.c.l.bf16 %v202_v12  ;;  %v204_v16 = vunpack.c.h.bf16 %v202_v12  ;;  %s250_s1 = smov [#allocation3]   ;;  %s180_s17 = sshll.u32 %s304_s2, 4  ;;  %s181_s17 = int_to_ptr.hbm [resolvable:$true] %s180_s17 }
   0x5   :  { %v126_v47 = vmax.f32 %v274_v1, 0.0  ;;  %s178_s14 = sshll.u32 %s250_s1, 4  ;;  %vm171_vm8 = vcmask 0   ;;  %s179_s14 = int_to_ptr.vmem [resolvable:$true] %s178_s14 }
   0x6   :  { %v71_v6 = vmul.f32 1.442695, %v69_v4  ;;  %v73_v7 = vmul.f32 1.442695, %v70_v5  ;;  %v93_v42 = vmul.f32 -0.5, %v203_v14  ;;  %v127_v48 = vmul.f32 %v203_v14, %v269_v0 }
   0x7   :  { %v128_v50 = vmul.f32 %v204_v16, %v274_v1  ;;  %v94_v59 = vmul.f32 -0.5, %v204_v16 }
   0x8   :  { %208 = vpow2.f32 %v71_v6  ;;  %v95_v60 = vadd.f32 0.75, %v93_v42  ;;  %v129_v63 = vsub.f32 %v125_v46, %v127_v48 }
   0x9   :  { %210 = vpow2.f32 %v73_v7  ;;  %v130_v0 = vsub.f32 %v126_v47, %v128_v50  ;;  %v96_v7 = vadd.f32 0.75, %v94_v59 }
   0xe   :  { %v209_v8 = vpop.eup %208 }
   0xf   :  { %v211_v9 = vpop.eup %210  ;;  %v75_v10 = vadd.f32 1.0, %v209_v8  ;;  %v134_v31 = vmul.f32 -0.5, %v209_v8  ;;  %v137_v39 = vand.u32 2147483647, %v209_v8 }
  0x10   :  { %v76_v11 = vadd.f32 1.0, %v211_v9  ;;  %v143_v32 = vmul.f32 -0.5, %v211_v9  ;;  %v146_v44 = vand.u32 2147483647, %v211_v9 }
  0x11   :  { %212 = vrcp.f32 %v75_v10  ;;  %v135_v36 = vadd.f32 1.0, %v134_v31  ;;  %vm287_vm2 = vcmp.lt.f32.partialorder %v137_v39, 0.0004427343 }
  0x12   :  { %214 = vrcp.f32 %v76_v11  ;;  %v144_v40 = vadd.f32 1.0, %v143_v32  ;;  %vm291_vm3 = vcmp.lt.f32.partialorder %v146_v44, 0.0004427343 }
  0x13   :  { %v136_v52 = vmul.f32 %v209_v8, %v135_v36 }
  0x14   :  { %v145_v56 = vmul.f32 %v211_v9, %v144_v40 }
  0x17   :  { %v213_v13 = vpop.eup %212 }
  0x18   :  { %v215_v15 = vpop.eup %214  ;;  %v81_v17 = vmul.f32 %v213_v13, %v209_v8 }
  0x19   :  { %v82_v18 = vmul.f32 %v215_v15, %v211_v9 }
  0x1a   :  { %v83_v19 = vsel %vm79_vm0, %v213_v13, %v81_v17 }
  0x1b   :  { %v84_v20 = vsel %vm80_vm1, %v215_v15, %v82_v18  ;;  %v85_v21 = vadd.f32 %v203_v14, %v83_v19  ;;  %v87_v22 = vmul.f32 %v203_v14, %v83_v19 }
  0x1c   :  { %v86_v23 = vadd.f32 %v204_v16, %v84_v20  ;;  %v88_v24 = vmul.f32 %v204_v16, %v84_v20 }
  0x1d   :  { %v89_v25 = vmul.f32 2.0, %v87_v22 }
  0x1e   :  { %v90_v26 = vmul.f32 2.0, %v88_v24 }
  0x1f   :  { %v91_v27 = vsub.f32 %v85_v21, %v89_v25 }
  0x20   :  { %v92_v28 = vsub.f32 %v86_v23, %v90_v26 }
  0x21   :  { %v97_v29 = vmax.f32 %v91_v27, 0.0 }
  0x22   :  { %v98_v30 = vmax.f32 %v92_v28, 0.0 }
  0x23   :  { %216 = vrsqrt.f32 %v97_v29  ;;  %vm106_vm4 = vcmp.eq.f32.partialorder %v97_v29, inf  ;;  %v109_v2 = vand.u32 2147483648, %v97_v29  ;;  %vm108_vm5 = vcmp.eq.f32.partialorder %v97_v29, 0.0 }
  0x24   :  { %218 = vrsqrt.f32 %v98_v30  ;;  %vm118_vm6 = vcmp.eq.f32.partialorder %v98_v30, inf  ;;  %v121_v6 = vand.u32 2147483648, %v98_v30  ;;  %vm120_vm7 = vcmp.eq.f32.partialorder %v98_v30, 0.0 }
  0x25   :  { %220 = vlog2.f32 %v75_v10 }
  0x26   :  { %222 = vlog2.f32 %v76_v11 }
  0x29   :  { %v217_v33 = vpop.eup %216 }
  0x2a   :  { %v219_v34 = vpop.eup %218  ;;  %v100_v35 = vmul.f32 %v217_v33, %v97_v29 }
  0x2b   :  { %v221_v37 = vpop.eup %220  ;;  %v112_v38 = vmul.f32 %v219_v34, %v98_v30 }
  0x2c   :  { %v223_v41 = vpop.eup %222  ;;  %v101_v43 = vmul.f32 %v217_v33, %v100_v35  ;;  %v133_v51 = vmul.f32 0.6931472, %v221_v37 }
  0x2d   :  { %v113_v45 = vmul.f32 %v219_v34, %v112_v38  ;;  %v142_v55 = vmul.f32 0.6931472, %v223_v41 }
  0x2e   :  { %v102_v49 = vmul.f32 0.5, %v101_v43  ;;  %v139_v1 = vsel %vm287_vm2, %v136_v52, %v133_v51 }
  0x2f   :  { %v114_v53 = vmul.f32 0.5, %v113_v45  ;;  %v148_v4 = vsel %vm291_vm3, %v145_v56, %v142_v55  ;;  %v149_v10 = vadd.f32 %v139_v1, %v129_v63 }
  0x30   :  { %v103_v57 = vsub.f32 1.5, %v102_v49  ;;  %v150_v13 = vadd.f32 %v148_v4, %v130_v0 }
  0x31   :  { %v115_v61 = vsub.f32 1.5, %v114_v53 }
  0x32   :  { %v104_v62 = vmul.f32 %v217_v33, %v103_v57 }
  0x33   :  { %v116_v3 = vmul.f32 %v219_v34, %v115_v61 }
  0x34   :  { %v105_v5 = vmul.f32 %v104_v62, %v97_v29 }
  0x35   :  { %v117_v8 = vmul.f32 %v116_v3, %v98_v30 }
  0x36   :  { %v107_v9 = vsel %vm106_vm4, %v97_v29, %v105_v5 }
  0x37   :  { %v110_v11 = vsel %vm108_vm5, %v109_v2, %v107_v9  ;;  %v119_v12 = vsel %vm118_vm6, %v98_v30, %v117_v8 }
  0x38   :  { %v122_v14 = vsel %vm120_vm7, %v121_v6, %v119_v12  ;;  %v123_v15 = vmul.f32 %v110_v11, %v95_v60 }
  0x39   :  { %v124_v16 = vmul.f32 %v122_v14, %v96_v7 }
  0x3a   :  { %v151_v17 = vmul.f32 %v149_v10, %v123_v15 }
  0x3b   :  { %v152_v18 = vmul.f32 %v150_v13, %v124_v16 }
  0x3d   :  { %v154_v19 = vadd.f32 %v152_v18, %v151_v17 }
  0x3f   :  { %161 = vadd.xlane.f32.xlu0 %v154_v19 }
  0xb2   :  { %v162_v20 = vpop.xlane.xlu0 %161 }
  0xb3   :  { %v163_v21 = vrot.slane %v162_v20, 4 }
  0xb5   :  { %v164_v22 = vadd.f32 %v163_v21, %v162_v20 }
  0xb7   :  { %v165_v23 = vrot.slane %v164_v22, 2 }
  0xb9   :  { %v166_v24 = vadd.f32 %v165_v23, %v164_v22 }
  0xbb   :  { %v167_v25 = vrot.slane %v166_v24, 1 }
  0xbd   :  { %v168_v26 = vadd.f32 %v167_v25, %v166_v24 }
  0xbf   :  { %205 = vpush %v168_v26 }
  0xf0   :  { %s206_s18 = spop %205 }
  0xf1   :  { %v170_v27 = vstv %s206_s18 }
  0xf2   :  { %172 = vst.msk [vmem:[#allocation3] sm:$0x1] %vm171_vm8, %v170_v27 }
  0xf3   :  { %183 = dma.vmem_to_hbm [thread:$0]  %s179_s14, 16, %s181_s17, [#allocation4]  }
  0xf4   :  { %248 = dma.done.wait [#allocation4], 16  }
  0xf5   :  { %249 = vsyncadd [#allocation4], 4294967280 }
  0xf6   :  { %188 = vsyncpa [#allocation4], 1 }

</bundles_post_ra>
